<compile_context>
chip_gen: v7x
topology: tpu7x:2x2x1
jax: 0.10.0
libtpu: 0.0.40
codegen_flags: <defaults>
</compile_context>

<pallas_src>
import functools

import jax
import jax.numpy as jnp
from jax.experimental import pallas as pl
from jax.experimental.pallas import tpu as pltpu


def _pow_int(x, g):
    """x ** g for a non-negative integer g via a multiply chain (VPU only)."""
    if g == 0:
        return jnp.ones_like(x)
    result = None
    base = x
    e = g
    while e:
        if e & 1:
            result = base if result is None else result * base
        e >>= 1
        if e:
            base = base * base
    return result


def _apply_gamma(one_minus_pt, gamma):
    g = float(gamma)
    if g.is_integer() and g >= 0:
        return _pow_int(one_minus_pt, int(g))
    # Non-integer gamma: pow on the EUP (base already clamped >= 0).
    return jnp.power(one_minus_pt, jnp.float32(g))


def _focal_kernel_n_on_lanes(gamma, want_per, n_valid, block_n,
                             logits_ref, targets_ref, at_ref, out_ref):
    """Small-C layout: logits (C, bn), targets/at (1, bn).  Samples on lanes."""
    logits = logits_ref[...].astype(jnp.float32)              # (C, bn)
    tgt = targets_ref[...]                                      # (1, bn) int32
    at = at_ref[...]                                            # (1, bn) f32
    c = logits.shape[0]

    # (C,1) iota broadcast against the target row -> no full-tile iota.
    cls = jax.lax.broadcasted_iota(jnp.int32, (c, 1), 0)
    mask = cls == tgt                                           # (C, bn) bool

    # cross_entropy(reduction='none') = logsumexp(logits) - logit[target]
    m = jnp.max(logits, axis=0, keepdims=True)                  # (1, bn)
    lse = m + jnp.log(jnp.sum(jnp.exp(logits - m), axis=0, keepdims=True))
    label_logit = jnp.sum(jnp.where(mask, logits, 0.0), axis=0, keepdims=True)
    ce = lse - label_logit                                      # (1, bn)
    pt = jnp.exp(-ce)

    ce = at * ce                                                # alpha hoisted
    focal = _apply_gamma(jnp.maximum(1.0 - pt, 0.0), gamma) * ce

    # Mask samples past N in the (unpadded) edge block -- select, not multiply.
    lane = jax.lax.broadcasted_iota(jnp.int32, (1, block_n), 1)
    valid = (pl.program_id(0) * block_n + lane) < n_valid
    focal = jnp.where(valid, focal, 0.0)

    if want_per:
        out_ref[...] = focal                                    # lane-dense row
    else:
        psum = jnp.sum(focal, axis=1, keepdims=True)            # (1, 1)
        out_ref[...] = jnp.broadcast_to(psum, (8, 128))


def _focal_kernel_c_on_lanes(gamma, want_per, n_valid, block_n,
                             logits_ref, targets_ref, at_ref, out_ref):
    """Wide-C layout: logits (bn, C), targets/at (bn, 1).  Classes on lanes."""
    logits = logits_ref[...].astype(jnp.float32)                # (bn, C)
    tgt = targets_ref[...]                                       # (bn, 1) int32
    at = at_ref[...]                                             # (bn, 1) f32
    c = logits.shape[1]

    cls = jax.lax.broadcasted_iota(jnp.int32, (1, c), 1)
    mask = cls == tgt                                            # (bn, C) bool

    m = jnp.max(logits, axis=1, keepdims=True)
    lse = m + jnp.log(jnp.sum(jnp.exp(logits - m), axis=1, keepdims=True))
    label_logit = jnp.sum(jnp.where(mask, logits, 0.0), axis=1, keepdims=True)
    ce = lse - label_logit                                       # (bn, 1)
    pt = jnp.exp(-ce)

    ce = at * ce
    focal = _apply_gamma(jnp.maximum(1.0 - pt, 0.0), gamma) * ce  # (bn, 1)

    row = jax.lax.broadcasted_iota(jnp.int32, (block_n, 1), 0)
    valid = (pl.program_id(0) * block_n + row) < n_valid
    focal = jnp.where(valid, focal, 0.0)

    if want_per:
        out_ref[...] = focal
    else:
        psum = jnp.sum(focal, axis=0, keepdims=True)             # (1, 1)
        out_ref[...] = jnp.broadcast_to(psum, (8, 128))


def focal_loss(logits, targets, *, gamma=2, alpha=None, reduction="mean",
               block_elems=1 << 20):
    """Pallas implementation of FocalLoss.forward.

    logits: (N, C) float (any float dtype; streamed natively), targets: (N,) int.
    block_elems: target number of logits elements per batch tile (~4 MiB f32).
    """
    if reduction not in ("mean", "sum", "none"):
        raise ValueError(f"unknown reduction {reduction!r}")
    n, c = logits.shape
    want_per = reduction == "none"

    targets = targets.astype(jnp.int32)
    # Alpha gather hoisted out of the kernel: an N-element gather, 4N bytes.
    if alpha is not None:
        at = jnp.take(jnp.asarray(alpha, dtype=jnp.float32), targets)
    else:
        at = jnp.ones((n,), jnp.float32)

    small_c = c < 128
    if small_c:
        # Samples on the lane axis (full 8x128 vreg occupancy).  One wrapper
        # transpose pass, native dtype, no pad, no cast.
        c_pad = max(8, -(-c // 8) * 8)
        bn = max(128, min((block_elems // c_pad // 128) * 128, 1 << 17))
        block_n = n if n <= bn else bn
        logits_in = logits.T                                     # (C, N)
        targets_in = targets.reshape(1, n)
        at_in = at.reshape(1, n)
        in_specs = [
            pl.BlockSpec((c, block_n), lambda i: (0, i)),
            pl.BlockSpec((1, block_n), lambda i: (0, i)),
            pl.BlockSpec((1, block_n), lambda i: (0, i)),
        ]
        per_shape = jax.ShapeDtypeStruct((1, n), jnp.float32)
        per_spec = pl.BlockSpec((1, block_n), lambda i: (0, i))
        body = _focal_kernel_n_on_lanes
    else:
        # C >= 128: classes stay on the lane axis; logits streamed untouched.
        bn = max(128, (block_elems // c // 128) * 128)
        block_n = n if n <= bn else bn
        logits_in = logits
        targets_in = targets.reshape(n, 1)
        at_in = at.reshape(n, 1)
        in_specs = [
            pl.BlockSpec((block_n, c), lambda i: (i, 0)),
            pl.BlockSpec((block_n, 1), lambda i: (i, 0)),
            pl.BlockSpec((block_n, 1), lambda i: (i, 0)),
        ]
        per_shape = jax.ShapeDtypeStruct((n, 1), jnp.float32)
        per_spec = pl.BlockSpec((block_n, 1), lambda i: (i, 0))
        body = _focal_kernel_c_on_lanes

    num_tiles = -(-n // block_n)

    if want_per:
        out_shape = per_shape
        out_spec = per_spec
    else:
        # One lane-dense (8,128) partial-sum block per tile: accumulator-free,
        # so the grid axis stays parallel/core-parallel friendly.
        out_shape = jax.ShapeDtypeStruct((num_tiles * 8, 128), jnp.float32)
        out_spec = pl.BlockSpec((8, 128), lambda i: (i, 0))

    kernel = functools.partial(body, gamma, want_per, n, block_n)

    out = pl.pallas_call(
        kernel,
        grid=(num_tiles,),
        in_specs=in_specs,
        out_specs=out_spec,
        out_shape=out_shape,
        compiler_params=pltpu.CompilerParams(
            # On v7x: switch to pltpu.CORE_PARALLEL to shard tiles across both
            # TensorCores (partial sums are already per-tile, so no change
            # needed in the kernel body).
            dimension_semantics=("parallel",),
            # Explicit limit: covers v5e's 16 MiB scoped default and leaves
            # headroom inside v7x's 64 MiB physical VMEM (double-buffered
            # input tile + f32 intermediates).
            vmem_limit_bytes=32 * 1024 * 1024,
        ),
    )(logits_in, targets_in, at_in)

    if want_per:
        return out[0, :] if small_c else out[:, 0]

    total = jnp.sum(out[::8, 0])           # one value per tile
    if reduction == "mean":
        return total / jnp.float32(n)
    return total


def _focal_loss_ref(logits, targets, *, gamma=2, alpha=None, reduction="mean"):
    """Pure-JAX reference mirroring the PyTorch module."""
    logits = logits.astype(jnp.float32)
    lse = jax.nn.logsumexp(logits, axis=-1)
    label_logit = jnp.take_along_axis(logits, targets[:, None], axis=-1)[:, 0]
    ce = lse - label_logit
    pt = jnp.exp(-ce)
    if alpha is not None:
        at = jnp.asarray(alpha, jnp.float32)[targets]
        ce = at * ce
    focal = (1.0 - pt) ** gamma * ce
    if reduction == "mean":
        return focal.mean()
    if reduction == "sum":
        return focal.sum()
    return focal


if __name__ == "__main__":
    key = jax.random.PRNGKey(0)
    k1, k2, k3, k4, k5, k6, k7 = jax.random.split(key, 7)

    checks = []

    # Small-C regime (typical FocalLoss use): N=8 samples, C=4 classes.
    N, C = 8, 4
    logits = jax.random.normal(k1, (N, C), jnp.float32)
    targets = jax.random.randint(k2, (N,), 0, C)
    alpha = [0.1, 0.2, 0.3, 0.4]

    checks.append((
        focal_loss(logits, targets, gamma=2, alpha=alpha, reduction="mean"),
        _focal_loss_ref(logits, targets, gamma=2, alpha=alpha,
                        reduction="mean")))
    checks.append((
        focal_loss(logits, targets, gamma=2, alpha=alpha, reduction="none"),
        _focal_loss_ref(logits, targets, gamma=2, alpha=alpha,
                        reduction="none")))
    checks.append((
        focal_loss(logits, targets, gamma=3, alpha=None, reduction="sum"),
        _focal_loss_ref(logits, targets, gamma=3, alpha=None,
                        reduction="sum")))

    # Small-C, multi-tile with a partial (unpadded) edge block.
    N1, C1 = 200, 4
    logits1 = jax.random.normal(k3, (N1, C1), jnp.float32)
    targets1 = jax.random.randint(k4, (N1,), 0, C1)
    checks.append((
        focal_loss(logits1, targets1, gamma=2, alpha=None, reduction="mean",
                   block_elems=8 * 128),
        _focal_loss_ref(logits1, targets1, gamma=2, alpha=None,
                        reduction="mean")))

    # Wide-C regime (C >= 128), bf16 logits streamed natively, multi-tile with
    # a partial edge block, alpha weighting.
    N2, C2 = 300, 128
    logits2 = jax.random.normal(k5, (N2, C2), jnp.float32).astype(jnp.bfloat16)
    targets2 = jax.random.randint(k6, (N2,), 0, C2)
    alpha2 = jax.random.uniform(k7, (C2,), jnp.float32, minval=0.05, maxval=1.0)

    checks.append((
        focal_loss(logits2, targets2, gamma=2, alpha=alpha2, reduction="mean",
                   block_elems=128 * 128),
        _focal_loss_ref(logits2.astype(jnp.float32), targets2, gamma=2,
                        alpha=alpha2, reduction="mean")))
    checks.append((
        focal_loss(logits2, targets2, gamma=2, alpha=alpha2, reduction="none",
                   block_elems=128 * 128),
        _focal_loss_ref(logits2.astype(jnp.float32), targets2, gamma=2,
                        alpha=alpha2, reduction="none")))

    for got, want in checks:
        got = jax.block_until_ready(got)
        assert jnp.allclose(got, want, atol=1e-4, rtol=1e-4), (got, want)

    print("KERNEL_OK")
</pallas_src>

<mosaic_0001>
module attributes {stable_mosaic.version = 11 : i64} {
  func.func @_focal_kernel_n_on_lanes(%arg0: i32, %arg1: memref<4x8xf32, #tpu.memory_space<vmem>>, %arg2: memref<1x8xi32, #tpu.memory_space<vmem>>, %arg3: memref<1x8xf32, #tpu.memory_space<vmem>>, %arg4: memref<8x128xf32, #tpu.memory_space<vmem>>) attributes {dimension_semantics = [#tpu.dimension_semantics<parallel>], iteration_bounds = array<i64: 1>, scalar_prefetch = 0 : i64, scratch_operands = 0 : i64, tpu.core_type = #tpu.core_type<tc>, window_params = [{transform_indices = @transform_0, window_bounds = array<i64: 4, 8>}, {transform_indices = @transform_1, window_bounds = array<i64: 1, 8>}, {transform_indices = @transform_2, window_bounds = array<i64: 1, 8>}, {transform_indices = @transform_3, window_bounds = array<i64: 8, 128>}]} {
    %c0 = arith.constant 0 : index
    %c0_0 = arith.constant 0 : index
    %0 = vector.load %arg1[%c0, %c0_0] : memref<4x8xf32, #tpu.memory_space<vmem>>, vector<4x8xf32>
    %c0_1 = arith.constant 0 : index
    %c0_2 = arith.constant 0 : index
    %1 = vector.load %arg2[%c0_1, %c0_2] : memref<1x8xi32, #tpu.memory_space<vmem>>, vector<1x8xi32>
    %c0_3 = arith.constant 0 : index
    %c0_4 = arith.constant 0 : index
    %2 = vector.load %arg3[%c0_3, %c0_4] : memref<1x8xf32, #tpu.memory_space<vmem>>, vector<1x8xf32>
    %3 = tpu.iota {dimensions = array<i32: 0>} : vector<4x1xi32>
    %4 = vector.broadcast %3 : vector<4x1xi32> to vector<4x8xi32>
    %5 = vector.broadcast %1 : vector<1x8xi32> to vector<4x8xi32>
    %6 = arith.cmpi eq, %4, %5 : vector<4x8xi32>
    %cst = arith.constant dense<0xFF800000> : vector<8xf32>
    %7 = vector.multi_reduction <maximumf>, %0, %cst [0] : vector<4x8xf32> to vector<8xf32>
    %8 = vector.shape_cast %7 : vector<8xf32> to vector<1x8xf32>
    %9 = vector.broadcast %8 : vector<1x8xf32> to vector<4x8xf32>
    %10 = arith.subf %0, %9 : vector<4x8xf32>
    %11 = math.exp %10 : vector<4x8xf32>
    %cst_5 = arith.constant dense<0.000000e+00> : vector<8xf32>
    %12 = vector.multi_reduction <add>, %11, %cst_5 [0] : vector<4x8xf32> to vector<8xf32>
    %13 = vector.shape_cast %12 : vector<8xf32> to vector<1x8xf32>
    %14 = math.log %13 : vector<1x8xf32>
    %15 = arith.addf %8, %14 : vector<1x8xf32>
    %cst_6 = arith.constant 0.000000e+00 : f32
    %16 = vector.broadcast %cst_6 : f32 to vector<4x8xf32>
    %17 = arith.select %6, %0, %16 : vector<4x8xi1>, vector<4x8xf32>
    %cst_7 = arith.constant dense<0.000000e+00> : vector<8xf32>
    %18 = vector.multi_reduction <add>, %17, %cst_7 [0] : vector<4x8xf32> to vector<8xf32>
    %19 = vector.shape_cast %18 : vector<8xf32> to vector<1x8xf32>
    %20 = arith.subf %15, %19 : vector<1x8xf32>
    %cst_8 = arith.constant 0.000000e+00 : f32
    %21 = vector.broadcast %cst_8 : f32 to vector<1x8xf32>
    %22 = arith.subf %21, %20 : vector<1x8xf32>
    %23 = math.exp %22 : vector<1x8xf32>
    %24 = arith.mulf %2, %20 : vector<1x8xf32>
    %cst_9 = arith.constant 1.000000e+00 : f32
    %25 = vector.broadcast %cst_9 : f32 to vector<1x8xf32>
    %26 = arith.subf %25, %23 : vector<1x8xf32>
    %cst_10 = arith.constant 0.000000e+00 : f32
    %27 = vector.broadcast %cst_10 : f32 to vector<1x8xf32>
    %28 = arith.maximumf %26, %27 : vector<1x8xf32>
    %29 = arith.mulf %28, %28 : vector<1x8xf32>
    %30 = arith.mulf %29, %24 : vector<1x8xf32>
    %31 = tpu.iota {dimensions = array<i32: 1>} : vector<1x8xi32>
    %c8_i32 = arith.constant 8 : i32
    %32 = arith.muli %arg0, %c8_i32 : i32
    %33 = vector.broadcast %32 : i32 to vector<1x8xi32>
    %34 = arith.addi %33, %31 : vector<1x8xi32>
    %c8_i32_11 = arith.constant 8 : i32
    %35 = vector.broadcast %c8_i32_11 : i32 to vector<1x8xi32>
    %36 = arith.cmpi slt, %34, %35 : vector<1x8xi32>
    %cst_12 = arith.constant 0.000000e+00 : f32
    %37 = vector.broadcast %cst_12 : f32 to vector<1x8xf32>
    %38 = arith.select %36, %30, %37 : vector<1x8xi1>, vector<1x8xf32>
    %cst_13 = arith.constant dense<0.000000e+00> : vector<1xf32>
    %39 = vector.multi_reduction <add>, %38, %cst_13 [1] : vector<1x8xf32> to vector<1xf32>
    %40 = vector.shape_cast %39 : vector<1xf32> to vector<1x1xf32>
    %41 = vector.shape_cast %40 : vector<1x1xf32> to vector<1x1xf32>
    %42 = vector.broadcast %41 : vector<1x1xf32> to vector<8x128xf32>
    %c0_14 = arith.constant 0 : index
    %c0_15 = arith.constant 0 : index
    %43 = vector.load %arg4[%c0_14, %c0_15] : memref<8x128xf32, #tpu.memory_space<vmem>>, vector<8x128xf32>
    tpu.vector_store %arg4[%c0_14, %c0_15], %42 {strides = array<i32>} : memref<8x128xf32, #tpu.memory_space<vmem>>, vector<8x128xf32>,
    return
  }
  func.func @transform_0(%arg0: i32) -> (i32, i32) {
    %c0_i32 = arith.constant 0 : i32
    %c0_i32_0 = arith.constant 0 : i32
    return %c0_i32, %arg0 : i32, i32
  }
  func.func @transform_1(%arg0: i32) -> (i32, i32) {
    %c0_i32 = arith.constant 0 : i32
    %c0_i32_0 = arith.constant 0 : i32
    return %c0_i32, %arg0 : i32, i32
  }
  func.func @transform_2(%arg0: i32) -> (i32, i32) {
    %c0_i32 = arith.constant 0 : i32
    %c0_i32_0 = arith.constant 0 : i32
    return %c0_i32, %arg0 : i32, i32
  }
  func.func @transform_3(%arg0: i32) -> (i32, i32) {
    %c0_i32 = arith.constant 0 : i32
    %c0_i32_0 = arith.constant 0 : i32
    return %arg0, %c0_i32 : i32, i32
  }
}

</mosaic_0001>

<bundles_post_ra>
// kernel: tpu_custom_call.1
= control target key start
LH: loop header
LB: loop body
LE: loop exit
PB: predicated region body
PF: predicated region fallthrough
CT: control target
= control target key end

     0   :  { %8 = vsyncpa [#allocation3], 0  ;;  %s218_s0 = inlined_call_operand.hbm [shape: f32[4,8], index: 0, kind: input, shape index: {}]   ;;  %s219_s1 = inlined_call_operand.vmem [shape: s32[1,8], index: 1, kind: input, shape index: {}]   ;;  %s220_s2 = inlined_call_operand.vmem [shape: f32[1,8], index: 2, kind: input, shape index: {}]   ;;  %s221_s3 = inlined_call_operand.hbm [shape: f32[8,128], index: 3, kind: output, shape index: {}]  }
   0x1   :  { %9 = vsyncpa [#allocation4], 0  ;;  %s163_s12 = smov [#allocation2]   ;;  %s115_s16 = scalar_lea.hbm %s218_s0, 64 }
   0x2   :  { %s16_s13 = sshll.u32 %s163_s12, 4  ;;  %p116_p0 = scmp.ne.s32.totalorder %s218_s0, %s115_s16  ;;  %s17_s13 = int_to_ptr.vmem [resolvable:$true] %s16_s13 }
   0x3   :  { %p119_p1 = scmp.lt.u32.totalorder %s115_s16, %s218_s0 }
   0x5   :  { %p121_p2 = pnand %p119_p1, %p116_p0 }
   0x7   :  { %124 = shalt.err (!%p121_p2)
}
   0x8   :  { %s125_s21 = scalar_lea.vmem %s17_s13, 64  ;;  %p130_p4 = scmp.lt.s32.totalorder %s17_s13, %s17_s13 }
   0x9   :  { %p126_p3 = scmp.ne.s32.totalorder %s17_s13, %s125_s21  ;;  %p131_p5 = scmp.lt.s32.totalorder %s125_s21, %s125_s21 }
   0xb   :  { %p132_p6 = por %p131_p5, %p130_p4 }
   0xd   :  { %p133_p7 = pnand %p132_p6, %p126_p3 }
   0xf   :  { %136 = shalt.err (!%p133_p7)
}
  0x10   :  { %19 = dma.hbm_to_vmem [thread:$0]  %s218_s0, 64, %s17_s13, [#allocation3]  }
  0x11   :  { %159 = dma.done.wait [#allocation3], 64  }
  0x12   :  { %160 = vsyncadd [#allocation3], 4294967232  ;;  %vm37_vm0 = vcmask 60416   ;;  %v27_v0 = vld [vmem:[#allocation2] sm:$0xf]  ;;  %v30_v9 = vlaneseq  ;;  %vm82_vm3 = vcmask 57344  }
  0x13   :  { %v38_v1 = vsel %vm37_vm0, %v27_v0, -inf  ;;  %v106_v12 = vld [vmem:[%s219_s1] ss:$0 sm:$0xff]  ;;  %s164_s26 = smov [#allocation5]  }
  0x14   :  { %v39_v2 = vrot.slane %v38_v1, 4  ;;  %v31_v11 = vshrl.u32 %v30_v9, 7  ;;  %v29_v36 = vld [vmem:[%s220_s2] sm:$0x1]  ;;  %v76_v38 = vand.u32 127, %v30_v9  ;;  %s97_s27 = sshll.u32 %s164_s26, 4  ;;  %s98_s27 = int_to_ptr.vmem [resolvable:$true] %s97_s27 }
  0x15   :  { %s137_s28 = scalar_lea.vmem %s98_s27, 128  ;;  %p142_p9 = scmp.lt.s32.totalorder %s98_s27, %s98_s27 }
  0x16   :  { %v40_v3 = vmax.f32 %v38_v1, %v39_v2  ;;  %vm36_vm1 = vcmp.eq.s32.totalorder %v31_v11, %v106_v12  ;;  %vm80_vm2 = vcmp.lt.s32.totalorder %v76_v38, 8  ;;  %v88_v45 = vsub.s32 0, %v31_v11  ;;  %p138_p8 = scmp.ne.s32.totalorder %s98_s27, %s137_s28  ;;  %p143_p10 = scmp.lt.s32.totalorder %s137_s28, %s137_s28 }
  0x17   :  { %v58_v13 = vsel %vm36_vm1, %v27_v0, 0.0 }
  0x18   :  { %v41_v4 = vrot.slane %v40_v3, 2  ;;  %v59_v17 = vsel %vm37_vm0, %v58_v13, 0.0  ;;  %p144_p11 = por %p143_p10, %p142_p9 }
  0x19   :  { %v60_v19 = vrot.slane %v59_v17, 4 }
  0x1a   :  { %v42_v5 = vmax.f32 %v40_v3, %v41_v4  ;;  %p145_p12 = pnand %p144_p11, %p138_p8 }
  0x1b   :  { %v61_v22 = vadd.f32 %v60_v19, %v59_v17 }
  0x1c   :  { %v43_v6 = vrot.slane %v42_v5, 1 }
  0x1d   :  { %v62_v25 = vrot.slane %v61_v22, 2 }
  0x1e   :  { %v44_v7 = vmax.f32 %v42_v5, %v43_v6 }
  0x1f   :  { %v63_v26 = vadd.f32 %v62_v25, %v61_v22 }
  0x20   :  { %v45_v8 = vsub.f32 %v27_v0, %v44_v7 }
  0x21   :  { %v64_v27 = vrot.slane %v63_v26, 1 }
  0x22   :  { %v46_v10 = vmul.f32 1.442695, %v45_v8 }
  0x23   :  { %v65_v30 = vadd.f32 %v64_v27, %v63_v26 }
  0x24   :  { %109 = vpow2.f32 %v46_v10 }
  0x2e   :  { %v110_v14 = vpop.eup %109 }
  0x2f   :  { %v48_v15 = vsel %vm37_vm0, %v110_v14, 0.0 }
  0x30   :  { %v49_v16 = vrot.slane %v48_v15, 4 }
  0x32   :  { %v50_v18 = vadd.f32 %v49_v16, %v48_v15 }
  0x34   :  { %v51_v20 = vrot.slane %v50_v18, 2 }
  0x36   :  { %v52_v21 = vadd.f32 %v51_v20, %v50_v18 }
  0x38   :  { %v53_v23 = vrot.slane %v52_v21, 1 }
  0x3a   :  { %v54_v24 = vadd.f32 %v53_v23, %v52_v21 }
  0x3c   :  { %111 = vlog2.f32 %v54_v24 }
  0x46   :  { %v112_v28 = vpop.eup %111 }
  0x47   :  { %v56_v29 = vmul.f32 0.6931472, %v112_v28 }
  0x49   :  { %v57_v31 = vadd.f32 %v56_v29, %v44_v7 }
  0x4b   :  { %v66_v32 = vsub.f32 %v57_v31, %v65_v30 }
  0x4d   :  { %v67_v33 = vsub.f32 0.0, %v66_v32  ;;  %v70_v39 = vmul.f32 %v66_v32, %v29_v36 }
  0x4f   :  { %v68_v34 = vmul.f32 1.442695, %v67_v33 }
  0x51   :  { %113 = vpow2.f32 %v68_v34 }
  0x5b   :  { %v114_v35 = vpop.eup %113 }
  0x5c   :  { %v71_v37 = vsub.f32 1.0, %v114_v35 }
  0x5e   :  { %v72_v40 = vmax.f32 %v71_v37, 0.0 }
  0x60   :  { %v73_v41 = vmul.f32 %v72_v40, %v72_v40 }
  0x62   :  { %v74_v42 = vmul.f32 %v73_v41, %v70_v39 }
  0x64   :  { %v81_v43 = vsel %vm80_vm2, %v74_v42, 0.0 }
  0x65   :  { %v83_v44 = vsel %vm82_vm3, %v81_v43, 0.0 }
  0x66   :  { %84 = vadd.xlane.f32.xlu0 %v83_v44 }
  0xf3   :  { %v85_v46 = vpop.xlane.xlu0 %84 }
  0xf4   :  { %v89_v47 = vrot.slane %v85_v46, %v88_v45 }
  0xf6   :  { %90 = vst [vmem:[#allocation5] sm:$0xff] %v89_v47 }
  0xf7   :  { %148 = shalt.err (!%p145_p12)
}
  0xf8   :  { %s149_s30 = scalar_lea.hbm %s221_s3, 128 }
  0xf9   :  { %p150_p13 = scmp.ne.s32.totalorder %s221_s3, %s149_s30  ;;  %p153_p0 = scmp.lt.u32.totalorder %s149_s30, %s221_s3 }
  0xfb   :  { %p155_p1 = pnand %p153_p0, %p150_p13 }
  0xfd   :  { %158 = shalt.err (!%p155_p1)
}
  0xfe   :  { %100 = dma.vmem_to_hbm [thread:$0]  %s98_s27, 128, %s221_s3, [#allocation4]  }
  0xff   :  { %161 = dma.done.wait [#allocation4], 128  }
 0x100   :  { %162 = vsyncadd [#allocation4], 4294967168 }
 0x101   :  { %104 = vsyncpa [#allocation3], 1 }
 0x102   :  { %105 = vsyncpa [#allocation4], 1 }

</bundles_post_ra>
